<compile_context>
chip_gen: v7x
topology: tpu7x:2x2x1
jax: 0.10.0
libtpu: 0.0.40
codegen_flags: <defaults>
</compile_context>

<pallas_src>
import jax
import jax.numpy as jnp
from jax import lax
from jax.experimental import pallas as pl
from jax.experimental.pallas import tpu as pltpu


# --------------------------------------------------------------------------- #
# Kernels
# --------------------------------------------------------------------------- #
def _ffn_stream_kernel(x_ref, wgu_ref, wd_ref, o_ref, acc_ref):
    """(i, k) grid: token tiles x I-tiles; f32 accumulator over the k axis."""
    k = pl.program_id(1)

    @pl.when(k == 0)
    def _():
        acc_ref[...] = jnp.zeros_like(acc_ref)

    ti = wd_ref.shape[1]
    x = x_ref[...]                                           # [tm, H]    bf16
    wgu = wgu_ref[0]                                         # [H, 2*ti]  bf16 (gate|up)
    gu = jnp.dot(x, wgu, preferred_element_type=jnp.float32)  # [tm, 2*ti] f32
    g = gu[:, :ti]
    u = gu[:, ti:]
    h = (g * jax.nn.sigmoid(g)) * u                          # SwiGLU (f32, VPU/EUP)
    acc_ref[...] += jnp.dot(h.astype(jnp.bfloat16), wd_ref[0],
                            preferred_element_type=jnp.float32)

    @pl.when(k == pl.num_programs(1) - 1)
    def _():
        o_ref[...] = acc_ref[...].astype(o_ref.dtype)


def _ffn_resident_kernel(x_ref, wgu_ref, wd_ref, o_ref, acc_ref):
    """1-D grid over token tiles; full weights resident in VMEM; in-kernel k loop."""
    nk = wgu_ref.shape[0]
    ti = wd_ref.shape[1]
    x = x_ref[...]                                           # [tm, H] bf16
    acc_ref[...] = jnp.zeros_like(acc_ref)

    def body(k, carry):
        gu = jnp.dot(x, wgu_ref[k], preferred_element_type=jnp.float32)
        g = gu[:, :ti]
        u = gu[:, ti:]
        h = (g * jax.nn.sigmoid(g)) * u
        acc_ref[...] += jnp.dot(h.astype(jnp.bfloat16), wd_ref[k],
                                preferred_element_type=jnp.float32)
        return carry

    lax.fori_loop(0, nk, body, 0)
    o_ref[...] = acc_ref[...].astype(o_ref.dtype)


# --------------------------------------------------------------------------- #
# Tiling / hardware helpers
# --------------------------------------------------------------------------- #
def _round_up(n, m):
    return -(-n // m) * m


def _choose_tile(dim, requested, align):
    """Balanced tile ~= requested (aligned); pads `dim` up to a tile multiple."""
    dim = max(int(dim), 1)
    req = max(align, _round_up(min(int(requested), dim), align))
    n = -(-dim // req)                      # number of tiles
    t = _round_up(-(-dim // n), align)      # balanced tile size
    return t, n * t                         # (tile, padded dim)


def _device_kind():
    try:
        return jax.devices()[0].device_kind.lower()
    except Exception:
        return ""


def _vmem_capacity_bytes():
    try:
        cap = getattr(pltpu.get_tpu_info(), "vmem_capacity_bytes", None)
        if cap:
            return int(cap)
    except Exception:
        pass
    kind = _device_kind()
    if "v7" in kind:
        return 64 * 1024 * 1024
    return 128 * 1024 * 1024


def _default_tm():
    kind = _device_kind()
    if any(v in kind for v in ("v2", "v3", "v4", "v5")):
        return 512            # near the v5e ridge; larger tiles buy little there
    return 1024               # v6e / v7x: flip the streamed-weight path compute-bound


def _stream_vmem_bytes(tm, H, ti, out_isz):
    return (2 * (tm * H * 2                  # x tile (double-buffered, bf16)
                 + H * 2 * ti * 2            # fused gate|up tile (bf16)
                 + ti * H * 2                # down tile (bf16)
                 + tm * H * out_isz)         # out tile
            + tm * H * 4                     # f32 accumulator
            + 2 * tm * 2 * ti * 4            # f32 gu + SwiGLU temporaries
            + tm * ti * 2)                   # bf16 h


def _resident_vmem_bytes(tm, H, i_pad, ti, out_isz):
    return (3 * H * i_pad * 2                # resident bf16 weights (single copy)
            + 2 * (tm * H * 2 + tm * H * out_isz)
            + tm * H * 4
            + 2 * tm * 2 * ti * 4
            + tm * ti * 2)


# --------------------------------------------------------------------------- #
# Weight preprocessing (hoisted to load time)
# --------------------------------------------------------------------------- #
def _prepare_weights(gate_up_w, down_w, ti, i_pad):
    """Once-per-model weight re-layout.

    gate_up_w: [2*I, H]  (torch nn.Linear layout; gate rows then up rows)
    down_w:    [H, I]
    Returns  wgu: [nk, H, 2*ti] bf16 (per I-tile: gate cols | up cols)
             wd:  [nk, ti, H]   bf16
    """
    two_i, H = gate_up_w.shape
    I = two_i // 2
    nk = i_pad // ti
    wg = gate_up_w[:I].T.astype(jnp.bfloat16)          # [H, I]
    wu = gate_up_w[I:].T.astype(jnp.bfloat16)          # [H, I]
    wd = down_w.T.astype(jnp.bfloat16)                 # [I, H]
    if i_pad != I:
        pad = i_pad - I                                # zero-pad -> contributes 0
        wg = jnp.pad(wg, ((0, 0), (0, pad)))
        wu = jnp.pad(wu, ((0, 0), (0, pad)))
        wd = jnp.pad(wd, ((0, pad), (0, 0)))
    wgu = jnp.concatenate(
        [wg.reshape(H, nk, ti).transpose(1, 0, 2),
         wu.reshape(H, nk, ti).transpose(1, 0, 2)], axis=-1)   # [nk, H, 2*ti]
    wd = wd.reshape(nk, ti, H)                                  # [nk, ti, H]
    return wgu, wd


# --------------------------------------------------------------------------- #
# Module wrapper
# --------------------------------------------------------------------------- #
class QwenFFNPallas:
    """QwenFFN forward; weight re-layout happens once at construction time."""

    def __init__(self, gate_up_w, down_w, *, ti=512, tm=None, out_dtype=None,
                 mode="auto"):
        two_i, H = gate_up_w.shape
        assert two_i % 2 == 0
        I = two_i // 2
        assert down_w.shape == (H, I)
        self.H, self.I = int(H), int(I)
        # Pad I up to a multiple of the *requested* ti (keeps ti=512 at I=4864).
        self.ti, self.i_pad = _choose_tile(I, ti, 128)
        self.nk = self.i_pad // self.ti
        self.tm_req = int(tm) if tm is not None else _default_tm()
        self.out_dtype = out_dtype
        self.mode = mode
        self.vmem_budget = int(0.85 * _vmem_capacity_bytes())
        # Hoisted: done exactly once, not per forward call.
        self.wgu, self.wd = _prepare_weights(gate_up_w, down_w, self.ti, self.i_pad)

    def __call__(self, x):
        B, S, H = x.shape
        assert H == self.H
        out_dtype = self.out_dtype or x.dtype
        out_isz = jnp.dtype(out_dtype).itemsize
        M = B * S

        # Token tiling: 16-row aligned (bf16 min sublane tile); prefer >=2 token
        # tiles so both v7x TensorCores get work on the parallel axis.
        tm_req = self.tm_req
        if M >= 512:
            tm_req = min(tm_req, _round_up(-(-M // 2), 16))
        tm, m_pad = _choose_tile(M, tm_req, 16)

        mode = self.mode
        if mode == "auto":
            fits = (_resident_vmem_bytes(tm, H, self.i_pad, self.ti, out_isz)
                    <= self.vmem_budget)
            mode = "resident" if fits else "stream"
        if mode == "stream":
            # Shrink tm if the streaming estimate would not fit the budget.
            while (tm > 256 and
                   _stream_vmem_bytes(tm, H, self.ti, out_isz) > self.vmem_budget):
                tm, m_pad = _choose_tile(M, max(256, tm // 2), 16)

        x2d = x.reshape(M, H).astype(jnp.bfloat16)
        if m_pad != M:
            x2d = jnp.pad(x2d, ((0, m_pad - M), (0, 0)))

        ti = self.ti

        if mode == "stream":
            vmem_limit = int(min(self.vmem_budget,
                                 max(_stream_vmem_bytes(tm, H, ti, out_isz)
                                     + (4 << 20), 32 << 20)))
            out2d = pl.pallas_call(
                _ffn_stream_kernel,
                out_shape=jax.ShapeDtypeStruct((m_pad, H), out_dtype),
                grid_spec=pltpu.PrefetchScalarGridSpec(
                    num_scalar_prefetch=0,
                    grid=(m_pad // tm, self.nk),
                    in_specs=[
                        pl.BlockSpec((tm, H), lambda i, k: (i, 0)),         # x rows
                        pl.BlockSpec((1, H, 2 * ti), lambda i, k: (k, 0, 0)),  # gate|up
                        pl.BlockSpec((1, ti, H), lambda i, k: (k, 0, 0)),   # down
                    ],
                    out_specs=pl.BlockSpec((tm, H), lambda i, k: (i, 0)),
                    scratch_shapes=[pltpu.VMEM((tm, H), jnp.float32)],
                ),
                compiler_params=pltpu.CompilerParams(
                    dimension_semantics=("parallel", "arbitrary"),
                    vmem_limit_bytes=vmem_limit,
                ),
            )(x2d, self.wgu, self.wd)
        else:
            vmem_limit = int(min(self.vmem_budget,
                                 max(_resident_vmem_bytes(tm, H, self.i_pad, ti,
                                                          out_isz) + (4 << 20),
                                     32 << 20)))
            out2d = pl.pallas_call(
                _ffn_resident_kernel,
                out_shape=jax.ShapeDtypeStruct((m_pad, H), out_dtype),
                grid_spec=pltpu.PrefetchScalarGridSpec(
                    num_scalar_prefetch=0,
                    grid=(m_pad // tm,),
                    in_specs=[
                        pl.BlockSpec((tm, H), lambda i: (i, 0)),            # x rows
                        # Full weight set resident in VMEM for the whole kernel
                        # (copied in once; no per-token-tile re-streaming).
                        pl.BlockSpec(memory_space=pltpu.MemorySpace.VMEM),
                        pl.BlockSpec(memory_space=pltpu.MemorySpace.VMEM),
                    ],
                    out_specs=pl.BlockSpec((tm, H), lambda i: (i, 0)),
                    scratch_shapes=[pltpu.VMEM((tm, H), jnp.float32)],
                ),
                compiler_params=pltpu.CompilerParams(
                    dimension_semantics=("parallel",),
                    vmem_limit_bytes=vmem_limit,
                ),
            )(x2d, self.wgu, self.wd)

        if m_pad != M:
            out2d = out2d[:M]
        return out2d.reshape(B, S, H)


def qwen_ffn(x, gate_up_w, down_w, *, ti=512, tm=None, mode="auto",
             out_dtype=None):
    """One-shot convenience wrapper. For repeated forwards, construct
    QwenFFNPallas once (weight re-layout is then amortized over calls)."""
    return QwenFFNPallas(gate_up_w, down_w, ti=ti, tm=tm, mode=mode,
                         out_dtype=out_dtype)(x)


# --------------------------------------------------------------------------- #
# Reference + test
# --------------------------------------------------------------------------- #
def _reference(x, gate_up_w, down_w):
    I = gate_up_w.shape[0] // 2
    gu = jnp.einsum("bsh,oh->bso", x, gate_up_w)
    g, u = gu[..., :I], gu[..., I:]
    h = jax.nn.silu(g) * u
    return jnp.einsum("bsi,hi->bsh", h, down_w)


if __name__ == "__main__":
    # Small stand-in for QwenConfig(hidden_size=896, intermediate_size=4864).
    B, S = 2, 16
    H, I = 64, 256

    key = jax.random.PRNGKey(0)
    kx, kgu, kd = jax.random.split(key, 3)

    x = jax.random.normal(kx, (B, S, H), dtype=jnp.float32)
    # PyTorch nn.Linear convention [out_features, in_features].
    gate_up_w = jax.random.normal(kgu, (2 * I, H), dtype=jnp.float32) * 0.05
    down_w = jax.random.normal(kd, (H, I), dtype=jnp.float32) * 0.05

    ref = _reference(x, gate_up_w, down_w)

    # Weight-resident path (production default for Qwen-0.5B-sized weights);
    # ti=128 here so the in-kernel I-tile loop runs more than once.
    ffn_resident = QwenFFNPallas(gate_up_w, down_w, ti=128, mode="resident")
    out_res = ffn_resident(x)
    jax.block_until_ready(out_res)
    assert out_res.shape == (B, S, H)
    assert jnp.allclose(out_res, ref, atol=2e-2, rtol=2e-2), (
        float(jnp.max(jnp.abs(out_res - ref))))

    # Streaming path (used when weights exceed the VMEM budget); small tiles so
    # both grid axes (token tiling and I-accumulation) are exercised.
    ffn_stream = QwenFFNPallas(gate_up_w, down_w, ti=128, tm=16, mode="stream")
    out_str = ffn_stream(x)
    jax.block_until_ready(out_str)
    assert out_str.shape == (B, S, H)
    assert jnp.allclose(out_str, ref, atol=2e-2, rtol=2e-2), (
        float(jnp.max(jnp.abs(out_str - ref))))

    print("KERNEL_OK")
</pallas_src>

<mosaic_0001>
module attributes {stable_mosaic.version = 11 : i64} {
  func.func @_ffn_resident_kernel(%arg0: i32, %arg1: memref<32x64xbf16, #tpu.memory_space<vmem>>, %arg2: memref<2x64x256xbf16, #tpu.memory_space<vmem>>, %arg3: memref<2x128x64xbf16, #tpu.memory_space<vmem>>, %arg4: memref<32x64xf32, #tpu.memory_space<vmem>>, %arg5: memref<32x64xf32, #tpu.memory_space<vmem>>) attributes {dimension_semantics = [#tpu.dimension_semantics<parallel>], iteration_bounds = array<i64: 1>, scalar_prefetch = 0 : i64, scratch_operands = 1 : i64, tpu.core_type = #tpu.core_type<tc>, window_params = [{transform_indices = @transform_0, window_bounds = array<i64: 32, 64>}, {pipeline_mode = #tpu.pipeline_mode<synchronous>, transform_indices = @transform_1, window_bounds = array<i64: 2, 64, 256>}, {pipeline_mode = #tpu.pipeline_mode<synchronous>, transform_indices = @transform_2, window_bounds = array<i64: 2, 128, 64>}, {transform_indices = @transform_3, window_bounds = array<i64: 32, 64>}]} {
    %c0 = arith.constant 0 : index
    %c0_0 = arith.constant 0 : index
    %0 = vector.load %arg1[%c0, %c0_0] : memref<32x64xbf16, #tpu.memory_space<vmem>>, vector<32x64xbf16>
    %cst = arith.constant 0.000000e+00 : f32
    %1 = vector.broadcast %cst : f32 to vector<32x64xf32>
    %c0_1 = arith.constant 0 : index
    %c0_2 = arith.constant 0 : index
    %2 = vector.load %arg5[%c0_1, %c0_2] : memref<32x64xf32, #tpu.memory_space<vmem>>, vector<32x64xf32>
    tpu.vector_store %arg5[%c0_1, %c0_2], %1 {strides = array<i32>} : memref<32x64xf32, #tpu.memory_space<vmem>>, vector<32x64xf32>,
    %c0_i32 = arith.constant 0 : i32
    %c2_i32 = arith.constant 2 : i32
    %3 = arith.addi %c0_i32, %c2_i32 : i32
    %c1_i32 = arith.constant 1 : i32
    scf.for %arg6 = %c0_i32 to %3 step %c1_i32  : i32 {
      %6 = arith.index_cast %arg6 : i32 to index
      %c0_8 = arith.constant 0 : index
      %c0_9 = arith.constant 0 : index
      %7 = vector.load %arg2[%6, %c0_8, %c0_9] : memref<2x64x256xbf16, #tpu.memory_space<vmem>>, vector<1x64x256xbf16>
      %8 = vector.shape_cast %7 : vector<1x64x256xbf16> to vector<64x256xbf16>
      %cst_10 = arith.constant dense<0.000000e+00> : vector<32x256xf32>
      %9 = tpu.matmul %0, %8, %cst_10 {dimension_numbers = #tpu.dot_dimension_numbers<[1], [0], [0], [1], [0, 0, 1, 1], [], []>} : vector<32x64xbf16>, vector<64x256xbf16>, vector<32x256xf32> -> vector<32x256xf32>
      %10 = vector.extract_strided_slice %9 {offsets = [0, 0], sizes = [32, 128], strides = [1, 1]} : vector<32x256xf32> to vector<32x128xf32>
      %11 = vector.extract_strided_slice %9 {offsets = [0, 128], sizes = [32, 128], strides = [1, 1]} : vector<32x256xf32> to vector<32x128xf32>
      %12 = arith.negf %10 : vector<32x128xf32>
      %13 = math.exp %12 : vector<32x128xf32>
      %cst_11 = arith.constant 1.000000e+00 : f32
      %14 = vector.broadcast %cst_11 : f32 to vector<32x128xf32>
      %15 = arith.addf %14, %13 : vector<32x128xf32>
      %16 = arith.divf %14, %15 : vector<32x128xf32>
      %17 = arith.mulf %10, %16 : vector<32x128xf32>
      %18 = arith.mulf %17, %11 : vector<32x128xf32>
      %c0_12 = arith.constant 0 : index
      %c0_13 = arith.constant 0 : index
      %19 = vector.load %arg5[%c0_12, %c0_13] : memref<32x64xf32, #tpu.memory_space<vmem>>, vector<32x64xf32>
      %20 = arith.truncf %18 : vector<32x128xf32> to vector<32x128xbf16>
      %21 = arith.index_cast %arg6 : i32 to index
      %c0_14 = arith.constant 0 : index
      %c0_15 = arith.constant 0 : index
      %22 = vector.load %arg3[%21, %c0_14, %c0_15] : memref<2x128x64xbf16, #tpu.memory_space<vmem>>, vector<1x128x64xbf16>
      %23 = vector.shape_cast %22 : vector<1x128x64xbf16> to vector<128x64xbf16>
      %cst_16 = arith.constant dense<0.000000e+00> : vector<32x64xf32>
      %24 = tpu.matmul %20, %23, %cst_16 {dimension_numbers = #tpu.dot_dimension_numbers<[1], [0], [0], [1], [0, 0, 1, 1], [], []>} : vector<32x128xbf16>, vector<128x64xbf16>, vector<32x64xf32> -> vector<32x64xf32>
      %25 = arith.addf %19, %24 : vector<32x64xf32>
      %c0_17 = arith.constant 0 : index
      %c0_18 = arith.constant 0 : index
      %26 = vector.load %arg5[%c0_17, %c0_18] : memref<32x64xf32, #tpu.memory_space<vmem>>, vector<32x64xf32>
      tpu.vector_store %arg5[%c0_17, %c0_18], %25 {strides = array<i32>} : memref<32x64xf32, #tpu.memory_space<vmem>>, vector<32x64xf32>,
    }
    %c2_i32_3 = arith.constant 2 : i32
    %c0_4 = arith.constant 0 : index
    %c0_5 = arith.constant 0 : index
    %4 = vector.load %arg5[%c0_4, %c0_5] : memref<32x64xf32, #tpu.memory_space<vmem>>, vector<32x64xf32>
    %c0_6 = arith.constant 0 : index
    %c0_7 = arith.constant 0 : index
    %5 = vector.load %arg4[%c0_6, %c0_7] : memref<32x64xf32, #tpu.memory_space<vmem>>, vector<32x64xf32>
    tpu.vector_store %arg4[%c0_6, %c0_7], %4 {strides = array<i32>} : memref<32x64xf32, #tpu.memory_space<vmem>>, vector<32x64xf32>,
    return
  }
  func.func @transform_0(%arg0: i32) -> (i32, i32) {
    %c0_i32 = arith.constant 0 : i32
    %c0_i32_0 = arith.constant 0 : i32
    return %arg0, %c0_i32 : i32, i32
  }
  func.func @transform_1(%arg0: i32) -> (i32, i32, i32) {
    %c0_i32 = arith.constant 0 : i32
    %c0_i32_0 = arith.constant 0 : i32
    %c0_i32_1 = arith.constant 0 : i32
    %c0_i32_2 = arith.constant 0 : i32
    return %c0_i32, %c0_i32_0, %c0_i32_1 : i32, i32, i32
  }
  func.func @transform_2(%arg0: i32) -> (i32, i32, i32) {
    %c0_i32 = arith.constant 0 : i32
    %c0_i32_0 = arith.constant 0 : i32
    %c0_i32_1 = arith.constant 0 : i32
    %c0_i32_2 = arith.constant 0 : i32
    return %c0_i32, %c0_i32_0, %c0_i32_1 : i32, i32, i32
  }
  func.func @transform_3(%arg0: i32) -> (i32, i32) {
    %c0_i32 = arith.constant 0 : i32
    %c0_i32_0 = arith.constant 0 : i32
    return %arg0, %c0_i32 : i32, i32
  }
}

</mosaic_0001>

<bundles_post_ra>
// kernel: tpu_custom_call.1
= control target key start
LH: loop header
LB: loop body
LE: loop exit
PB: predicated region body
PF: predicated region fallthrough
CT: control target
= control target key end

     0   :  { %8 = vsyncpa [#allocation4], 0  ;;  %vm20_vm0 = vcmask 523264   ;;  %v485_v4 = vmov 0.0   ;;  %s534_s20 = smov 0   ;;  %s585_s0 = inlined_call_operand.vmem [shape: bf16[32,64], index: 0, kind: input, shape index: {}]   ;;  %s586_s1 = inlined_call_operand.vmem [shape: bf16[2,64,256], index: 1, kind: input, shape index: {}]   ;;  %s587_s2 = inlined_call_operand.vmem [shape: bf16[2,128,64], index: 2, kind: input, shape index: {}]   ;;  %s588_s3 = inlined_call_operand.hbm [shape: f32[32,64], index: 3, kind: output, shape index: {}]  }
   0x1   :  { %v513_v0 = vld [vmem:[%s585_s0] sm:$0xf]  ;;  %v518_v1 = vld [vmem:[%s585_s0 + $0x4] sm:$0xf]  ;;  %v523_v2 = vld [vmem:[%s585_s0 + $0x8] sm:$0xf] }
   0x2   :  { %v528_v3 = vld [vmem:[%s585_s0 + $0xc] sm:$0xf]  ;;  %21 = vst.msk [vmem:[#allocation2] sm:$0xff] %vm20_vm0, %v485_v4  ;;  %22 = vst.msk [vmem:[#allocation2 + $0x8] sm:$0xff] %vm20_vm0, %v485_v4 }
   0x3   :  { %23 = vst.msk [vmem:[#allocation2 + $0x10] sm:$0xff] %vm20_vm0, %v485_v4  ;;  %24 = vst.msk [vmem:[#allocation2 + $0x18] sm:$0xff] %vm20_vm0, %v485_v4 }
   0x4 LB: > { %v486_v5 = vmov 0   ;;  %s372_s0 = sshll.u32 %s483_s20, 6  ;;  %v347_v14 = vcombine.low %v513_v0, %v518_v1  ;;  %v348_v15 = vcombine.low %v523_v2, %v528_v3  ;;  %s30_s20 = sadd.s32 1, %s483_s20   ;;  %s483_s20 = sphi %s534_s20, %s30_s20  }
   0x5   : > { %130 = vmatprep.mubr.bf16.mxu0 %v486_v5  ;;  %s33_s23 = scalar_lea.vmem %s586_s1, %s372_s0  ;;  %s546_s26 = scalar_lea.vmem %s587_s2, %s372_s0 }
   0x6   : > { %v417_v6 = vld [vmem:[%s33_s23 + $0x4] ss:$8 sps:$4 sm:$0xff]   ;;  %v419_v7 = vld [vmem:[%s33_s23] ss:$8 sps:$4 sm:$0xff]   ;;  %v420_v8 = vld [vmem:[%s33_s23 + $0x14] ss:$8 sps:$4 sm:$0xff]  }
   0x7   : > { %98 = vmatprep.subr.bf16.mxu0 %v417_v6  ;;  %v422_v9 = vld [vmem:[%s33_s23 + $0x10] ss:$8 sps:$4 sm:$0xff]   ;;  %v423_v10 = vld [vmem:[%s33_s23 + $0x24] ss:$8 sps:$4 sm:$0xff]   ;;  %v425_v11 = vld [vmem:[%s33_s23 + $0x20] ss:$8 sps:$4 sm:$0xff]  }
   0x8   : > { %99 = vmatpush1.bf16.msra.mxu0 %v419_v7  ;;  %v426_v12 = vld [vmem:[%s33_s23 + $0x34] ss:$8 sps:$4 sm:$0xff]   ;;  %v428_v13 = vld [vmem:[%s33_s23 + $0x30] ss:$8 sps:$4 sm:$0xff]   ;;  %v429_v16 = vld [vmem:[%s546_s26] sm:$0xff]   ;;  %p27_p0 = scmp.ge.s32.totalorder %s30_s20, 2  }
   0x9   : > { %100 = vmatprep.subr.bf16.mxu0 %v420_v8  ;;  %384 = vmatprep.subr.bf16.mxu1 %v429_v16  ;;  %v430_v17 = vld [vmem:[%s546_s26 + $0x8] sm:$0xff]   ;;  %v431_v18 = vld [vmem:[%s546_s26 + $0x10] sm:$0xff]   ;;  %v432_v19 = vld [vmem:[%s546_s26 + $0x18] sm:$0xff]   ;;  %s487_s27 = smov (%p27_p0), [#allocation3]  }
   0xa   : > { %385 = vmatpush3.bf16.msra.mxu1 %v429_v16  ;;  %v433_v20 = vld [vmem:[%s546_s26 + $0x20] sm:$0xff]   ;;  %v434_v21 = vld [vmem:[%s546_s26 + $0x28] sm:$0xff]   ;;  %v435_v22 = vld [vmem:[%s546_s26 + $0x30] sm:$0xff]   ;;  %s325_s28 = sshll.u32 (%p27_p0), %s487_s27, 4  ;;  %s326_s28 = int_to_ptr.vmem [resolvable:$true] %s325_s28 }
   0xb   : > { %386 = vmatprep.subr.bf16.mxu1 %v430_v17  ;;  %v436_v23 = vld [vmem:[%s546_s26 + $0x38] sm:$0xff]   ;;  %v185_v58 = vld [vmem:[#allocation2 + $0x10] sm:$0xff]  ;;  %v183_v59 = vld [vmem:[#allocation2] sm:$0xff]  ;;  %s453_s29 = scalar_lea.vmem (%p27_p0), %s326_s28, 512  ;;  %p458_p2 = scmp.lt.s32.totalorder (%p27_p0), %s326_s28, %s326_s28 }
   0xc   : > { %101 = vmatpush1.bf16.msra.mxu0 %v422_v9  ;;  %v186_v61 = vld [vmem:[#allocation2 + $0x18] sm:$0xff]  ;;  %v184_v4 = vld [vmem:[#allocation2 + $0x8] sm:$0xff]  ;;  %p454_p1 = scmp.ne.s32.totalorder (%p27_p0), %s326_s28, %s453_s29  ;;  %p459_p3 = scmp.lt.s32.totalorder (%p27_p0), %s453_s29, %s453_s29 }
   0xd   : > { %102 = vmatprep.subr.bf16.mxu0 %v423_v10 }
   0xe   : > { %387 = vmatpush3.bf16.msra.mxu1 %v430_v17  ;;  %p460_p4 = por (%p27_p0), %p459_p3, %p458_p2 }
   0xf   : > { %388 = vmatprep.subr.bf16.mxu1 %v431_v18 }
  0x10   : > { %103 = vmatpush1.bf16.msra.mxu0 %v425_v11  ;;  %p461_p5 = pnand (%p27_p0), %p460_p4, %p454_p1 }
  0x11   : > { %104 = vmatprep.subr.bf16.mxu0 %v426_v12 }
  0x12   : > { %389 = vmatpush3.bf16.msra.mxu1 %v431_v18 }
  0x13   : > { %390 = vmatprep.subr.bf16.mxu1 %v432_v19 }
  0x14   : > { %105 = vmatpush1.bf16.msra.mxu0 %v428_v13 }
  0x16   : > { %391 = vmatpush3.bf16.msra.mxu1 %v432_v19 }
  0x17   : > { %357 = vmatmul.mubr.msk.bf16.vlgmr.msra.gmra.mrb[0].mxu0 %vm20_vm0, %v347_v14  ;;  %392 = vmatprep.subr.bf16.mxu1 %v433_v20 }
  0x18   : > { %140 = vmatprep.mubr.bf16.mxu0 %v486_v5 }
  0x1a   : > { %393 = vmatpush3.bf16.msra.mxu1 %v433_v20 }
  0x1b   : > { %394 = vmatprep.subr.bf16.mxu1 %v434_v21 }
  0x1e   : > { %395 = vmatpush3.bf16.msra.mxu1 %v434_v21 }
  0x1f   : > { %358 = vmatmul.mubr.msk.bf16.gmra.mrb[4].mxu0 %vm20_vm0, %v348_v15  ;;  %396 = vmatprep.subr.bf16.mxu1 %v435_v22 }
  0x22   : > { %397 = vmatpush3.bf16.msra.mxu1 %v435_v22 }
  0x23   : > { %398 = vmatprep.subr.bf16.mxu1 %v436_v23 }
  0x26   : > { %399 = vmatpush3.bf16.msra.mxu1 %v436_v23 }
  0xea   : > { %v132_v24 = vpop.f32.mrb[0].mxu0 }
  0xeb   : > { %v359_v25 = vmul.f32 -1.442695, %v132_v24  ;;  %v134_v26 = vpop.f32.mrb[1].mxu0 }
  0xec   : > { %v136_v27 = vpop.f32.mrb[2].mxu0 }
  0xed   : > { %437 = vpow2.f32 %v359_v25  ;;  %v360_v28 = vmul.f32 -1.442695, %v136_v27  ;;  %v138_v29 = vpop.f32.mrb[3].mxu0 }
  0xef   : > { %439 = vpow2.f32 %v360_v28 }
  0xf2   : > { %v142_v30 = vpop.f32.mrb[4].mxu0 }
  0xf3   : > { %v361_v31 = vmul.f32 -1.442695, %v142_v30  ;;  %v144_v32 = vpop.f32.mrb[5].mxu0 }
  0xf4   : > { %v146_v33 = vpop.f32.mrb[6].mxu0 }
  0xf5   : > { %441 = vpow2.f32 %v361_v31  ;;  %v362_v34 = vmul.f32 -1.442695, %v146_v33  ;;  %v148_v35 = vpop.f32.mrb[7].mxu0 }
  0xf7   : > { %v438_v36 = vpop.eup %437  ;;  %443 = vpow2.f32 %v362_v34 }
  0xf8   : > { %v163_v37 = vadd.f32 1.0, %v438_v36 }
  0xf9   : > { %v440_v38 = vpop.eup %439 }
  0xfa   : > { %445 = vrcp.f32 %v163_v37  ;;  %v164_v39 = vadd.f32 1.0, %v440_v38 }
  0xfc   : > { %447 = vrcp.f32 %v164_v39 }
  0xff   : > { %v442_v40 = vpop.eup %441 }
 0x100   : > { %v165_v41 = vadd.f32 1.0, %v442_v40 }
 0x101   : > { %v444_v42 = vpop.eup %443 }
 0x102   : > { %449 = vrcp.f32 %v165_v41  ;;  %v166_v43 = vadd.f32 1.0, %v444_v42 }
 0x104   : > { %v446_v44 = vpop.eup %445  ;;  %451 = vrcp.f32 %v166_v43 }
 0x105   : > { %v175_v45 = vmul.f32 %v446_v44, %v132_v24 }
 0x106   : > { %v448_v46 = vpop.eup %447 }
 0x107   : > { %v179_v47 = vmul.f32 %v175_v45, %v134_v26  ;;  %v176_v48 = vmul.f32 %v448_v46, %v136_v27 }
 0x109   : > { %v180_v49 = vmul.f32 %v176_v48, %v138_v29 }
 0x10b   : > { %v187_v50 = vpack.c.bf16 %v180_v49, %v179_v47 }
 0x10c   : > { %v450_v51 = vpop.eup %449 }
 0x10d   : > { %v177_v52 = vmul.f32 %v450_v51, %v142_v30  ;;  %400 = vmatprep.mubr.bf16.mxu1 %v187_v50 }
 0x10e   : > { %v452_v53 = vpop.eup %451 }
 0x10f   : > { %v181_v54 = vmul.f32 %v177_v52, %v144_v32  ;;  %v178_v55 = vmul.f32 %v452_v53, %v146_v33 }
 0x111   : > { %v182_v56 = vmul.f32 %v178_v55, %v148_v35 }
 0x113   : > { %v188_v57 = vpack.c.bf16 %v182_v56, %v181_v54 }
 0x115   : > { %401 = vmatmul.mubr.bf16.vlgmr.msra.gmra.mrb[0].mxu1 %v188_v57 }
 0x1e8   : > { %v402_v60 = vpop.f32.mrb[0].mxu1  ;;  %29 = sbr.rel (!%p27_p0) target bundleno = 4 (0x4), region = 41 }
 0x1e9   : > { %v306_v62 = vadd.f32 %v402_v60, %v185_v58  ;;  %v289_v63 = vpop.f32.mrb[1].mxu1 }
 0x1ea   : > { %v304_v5 = vadd.f32 %v289_v63, %v183_v59  ;;  %v403_v6 = vpop.f32.mrb[2].mxu1 }
 0x1eb   : > { %310 = vst.msk [vmem:[#allocation2 + $0x10] sm:$0xff] %vm20_vm0, %v306_v62  ;;  %v307_v7 = vadd.f32 %v403_v6, %v186_v61  ;;  %v292_v8 = vpop.f32.mrb[3].mxu1 }
 0x1ec   : > { %308 = vst.msk [vmem:[#allocation2] sm:$0xff] %vm20_vm0, %v304_v5  ;;  %v305_v9 = vadd.f32 %v292_v8, %v184_v4 }
 0x1ed   : > { %311 = vst.msk [vmem:[#allocation2 + $0x18] sm:$0xff] %vm20_vm0, %v307_v7 }
 0x1ee   : > { %309 = vst.msk [vmem:[#allocation2 + $0x8] sm:$0xff] %vm20_vm0, %v305_v9 }
 0x1f2   :  { %v314_v12 = vld [vmem:[#allocation2 + $0x10] sm:$0xff] }
 0x1f3   :  { %v312_v10 = vld [vmem:[#allocation2] sm:$0xff]  ;;  %318 = vst.msk [vmem:[#allocation3 + $0x10] sm:$0xff] %vm20_vm0, %v314_v12 }
 0x1f4   :  { %316 = vst.msk [vmem:[#allocation3] sm:$0xff] %vm20_vm0, %v312_v10  ;;  %v315_v13 = vld [vmem:[#allocation2 + $0x18] sm:$0xff] }
 0x1f5   :  { %v313_v11 = vld [vmem:[#allocation2 + $0x8] sm:$0xff]  ;;  %319 = vst.msk [vmem:[#allocation3 + $0x18] sm:$0xff] %vm20_vm0, %v315_v13 }
 0x1f6   :  { %317 = vst.msk [vmem:[#allocation3 + $0x8] sm:$0xff] %vm20_vm0, %v313_v11 }
 0x1f7   :  { %464 = shalt.err (!%p461_p5)
}
 0x1f8   :  { %s465_s30 = scalar_lea.hbm %s588_s3, 512 }
 0x1f9   :  { %p466_p6 = scmp.ne.s32.totalorder %s588_s3, %s465_s30  ;;  %p469_p7 = scmp.lt.u32.totalorder %s465_s30, %s588_s3 }
 0x1fb   :  { %p471_p8 = pnand %p469_p7, %p466_p6 }
 0x1fd   :  { %474 = shalt.err (!%p471_p8)
}
 0x1fe   :  { %s488_s8 = smov 128   ;;  %s489_s9 = smov 8  }
 0x1ff   :  { %331 = dma.vmem_to_hbm [thread:$0]  %s326_s28, 512, %s588_s3, [#allocation4], %s488_s8, %s488_s8, %s489_s9  }
 0x200   :  { %479 = dma.done.wait [#allocation4], 512  }
 0x201   :  { %480 = vsyncadd [#allocation4], 4294966784 }
 0x202   :  { %335 = vsyncpa [#allocation4], 1 }

</bundles_post_ra>
